<compile_context>
chip_gen: v7x
topology: tpu7x:2x2x1
jax: 0.10.0
libtpu: 0.0.40
codegen_flags: <defaults>
</compile_context>

<pallas_src>
import functools

import numpy as np
import jax
import jax.numpy as jnp
from jax.experimental import pallas as pl
from jax.experimental.pallas import tpu as pltpu


def _round_up(x, m):
    return ((x + m - 1) // m) * m


def _choose_tile(d, max_tile, unit):
    """Largest multiple of `unit` <= max_tile that divides d (d assumed multiple of unit)."""
    if d <= max_tile:
        return d
    t = (max_tile // unit) * unit
    while t > unit and d % t != 0:
        t -= unit
    return t


# ----------------------------------------------------------------------------
# Tiled MXU matmul; optional fused per-K-column BatchNorm affine + ReLU on A
# (this is the BN+ReLU of the *previous* layer, applied on the fly).
# ----------------------------------------------------------------------------
def _matmul_kernel(a_ref, b_ref, o_ref, acc_ref):
    @pl.when(pl.program_id(2) == 0)
    def _():
        acc_ref[...] = jnp.zeros_like(acc_ref)

    acc_ref[...] += jnp.dot(a_ref[...], b_ref[...],
                            preferred_element_type=jnp.float32)

    @pl.when(pl.program_id(2) == pl.num_programs(2) - 1)
    def _():
        o_ref[...] = acc_ref[...].astype(o_ref.dtype)


def _matmul_bn_relu_kernel(a_ref, b_ref, scale_ref, shift_ref, o_ref, acc_ref):
    @pl.when(pl.program_id(2) == 0)
    def _():
        acc_ref[...] = jnp.zeros_like(acc_ref)

    a = a_ref[...].astype(jnp.float32)
    a = jnp.maximum(a * scale_ref[...] + shift_ref[...], 0.0)   # BN + ReLU (prev layer)
    acc_ref[...] += jnp.dot(a.astype(b_ref.dtype), b_ref[...],
                            preferred_element_type=jnp.float32)

    @pl.when(pl.program_id(2) == pl.num_programs(2) - 1)
    def _():
        o_ref[...] = acc_ref[...].astype(o_ref.dtype)


def pallas_matmul(a, b, scale=None, shift=None, out_dtype=jnp.bfloat16):
    """(M, K) @ (K, N) -> (M, N).  If scale/shift are given, A is first mapped
    per-K-column to relu(A*scale + shift) (fused BatchNorm+ReLU prologue)."""
    M, K = a.shape
    K2, N = b.shape
    assert K == K2
    fuse = scale is not None

    Mp = _round_up(M, 8)
    tm = _choose_tile(Mp, 512, 8)
    if K <= 2048:
        tk, Kp = K, K
    else:
        tk, Kp = 512, _round_up(K, 512)
    if N <= 1024:
        tn, Np = N, N
    else:
        Np = _round_up(N, 128)
        tn = _choose_tile(Np, 512, 128)

    a_p = jnp.pad(a, ((0, Mp - M), (0, Kp - K))) if (Mp > M or Kp > K) else a
    b_p = jnp.pad(b, ((0, Kp - K), (0, Np - N))) if (Kp > K or Np > N) else b

    in_specs = [pl.BlockSpec((tm, tk), lambda i, j, k: (i, k)),
                pl.BlockSpec((tk, tn), lambda i, j, k: (k, j))]
    args = [a_p, b_p]
    if fuse:
        scale_p = scale.reshape(1, K).astype(jnp.float32)
        shift_p = shift.reshape(1, K).astype(jnp.float32)
        if Kp > K:
            scale_p = jnp.pad(scale_p, ((0, 0), (0, Kp - K)))
            shift_p = jnp.pad(shift_p, ((0, 0), (0, Kp - K)))
        in_specs += [pl.BlockSpec((1, tk), lambda i, j, k: (0, k)),
                     pl.BlockSpec((1, tk), lambda i, j, k: (0, k))]
        args += [scale_p, shift_p]
        kernel = _matmul_bn_relu_kernel
    else:
        kernel = _matmul_kernel

    out = pl.pallas_call(
        kernel,
        out_shape=jax.ShapeDtypeStruct((Mp, Np), out_dtype),
        grid_spec=pltpu.PrefetchScalarGridSpec(
            num_scalar_prefetch=0,
            grid=(Mp // tm, Np // tn, Kp // tk),
            in_specs=in_specs,
            out_specs=pl.BlockSpec((tm, tn), lambda i, j, k: (i, j)),
            scratch_shapes=[pltpu.VMEM((tm, tn), jnp.float32)]),
        compiler_params=pltpu.CompilerParams(
            dimension_semantics=("parallel", "parallel", "arbitrary")),
    )(*args)
    if Mp > M or Np > N:
        out = out[:M, :N]
    return out


# ----------------------------------------------------------------------------
# Fold kernel: per-tap GEMM output -> stride-2 upsampled image.
#   out[b, 2i+r, 2j+c, :] = sum_{a,b2 in {0,1}} Y[b, i+r-a, j+c-b2, tap(2a+1-r, 2b2+1-c), :]
# The output buffer is (B, 2H, W, 2C): bit-identical layout to NHWC (B,2H,2W,C),
# so the final interleave is a free reshape.  Also emits fused BN statistics
# (per-channel sum / sum of squares) and optionally applies Tanh.
# ----------------------------------------------------------------------------
def _fold_kernel(ym_ref, yc_ref, ypl_ref, o_ref, s_ref, q_ref, *, W, C, apply_tanh):
    i = pl.program_id(1)

    def tap(y_ref, kh, kw, cs):
        t = 4 * kh + kw
        return y_ref[0, 0, cs:cs + W, t * C:(t + 1) * C].astype(jnp.float32)

    # output row 2*i   (row parity r=0): taps kh=1 (row i), kh=3 (row i-1)
    r0c0 = tap(yc_ref, 1, 1, 1) + tap(yc_ref, 1, 3, 0) + tap(ym_ref, 3, 1, 1) + tap(ym_ref, 3, 3, 0)
    r0c1 = tap(yc_ref, 1, 0, 2) + tap(yc_ref, 1, 2, 1) + tap(ym_ref, 3, 0, 2) + tap(ym_ref, 3, 2, 1)
    # output row 2*i+1 (row parity r=1): taps kh=0 (row i+1), kh=2 (row i)
    r1c0 = tap(ypl_ref, 0, 1, 1) + tap(ypl_ref, 0, 3, 0) + tap(yc_ref, 2, 1, 1) + tap(yc_ref, 2, 3, 0)
    r1c1 = tap(ypl_ref, 0, 0, 2) + tap(ypl_ref, 0, 2, 1) + tap(yc_ref, 2, 0, 2) + tap(yc_ref, 2, 2, 1)

    # fused BatchNorm statistics for the next layer (accumulated over the row axis)
    @pl.when(i == 0)
    def _():
        s_ref[...] = jnp.zeros_like(s_ref)
        q_ref[...] = jnp.zeros_like(q_ref)

    psum = (jnp.sum(r0c0, axis=0, keepdims=True) +
            jnp.sum(r0c1, axis=0, keepdims=True) +
            jnp.sum(r1c0, axis=0, keepdims=True) +
            jnp.sum(r1c1, axis=0, keepdims=True))
    psq = (jnp.sum(r0c0 * r0c0, axis=0, keepdims=True) +
           jnp.sum(r0c1 * r0c1, axis=0, keepdims=True) +
           jnp.sum(r1c0 * r1c0, axis=0, keepdims=True) +
           jnp.sum(r1c1 * r1c1, axis=0, keepdims=True))
    s_ref[0] = s_ref[0] + psum
    q_ref[0] = q_ref[0] + psq

    row0 = jnp.concatenate([r0c0, r0c1], axis=-1)   # (W, 2C): columns 2j / 2j+1 interleaved
    row1 = jnp.concatenate([r1c0, r1c1], axis=-1)
    if apply_tanh:
        row0 = jnp.tanh(row0)
        row1 = jnp.tanh(row1)
    o_ref[0, 0] = row0.astype(o_ref.dtype)
    o_ref[0, 1] = row1.astype(o_ref.dtype)


def conv_transpose_fold(y, B, H, W, C, out_dtype, apply_tanh):
    """y: (B*H*W, 16*C) per-tap GEMM output of a ConvTranspose2d(4,4,2,1).
    Returns (out, ssum, ssq); out has shape (B, 2H, W, 2C) whose flat layout
    equals the NHWC image (B, 2H, 2W, C)."""
    y4 = y.reshape(B, H, W, 16 * C)
    yp = jnp.pad(y4, ((0, 0), (1, 1), (1, 1), (0, 0)))   # spatial halo of 1
    Wp = W + 2
    kernel = functools.partial(_fold_kernel, W=W, C=C, apply_tanh=apply_tanh)
    out, ssum, ssq = pl.pallas_call(
        kernel,
        out_shape=(jax.ShapeDtypeStruct((B, 2 * H, W, 2 * C), out_dtype),
                   jax.ShapeDtypeStruct((B, 1, C), jnp.float32),
                   jax.ShapeDtypeStruct((B, 1, C), jnp.float32)),
        grid_spec=pltpu.PrefetchScalarGridSpec(
            num_scalar_prefetch=0,
            grid=(B, H),
            in_specs=[pl.BlockSpec((1, 1, Wp, 16 * C), lambda b, i: (b, i, 0, 0)),
                      pl.BlockSpec((1, 1, Wp, 16 * C), lambda b, i: (b, i + 1, 0, 0)),
                      pl.BlockSpec((1, 1, Wp, 16 * C), lambda b, i: (b, i + 2, 0, 0))],
            out_specs=(pl.BlockSpec((1, 2, W, 2 * C), lambda b, i: (b, i, 0, 0)),
                       pl.BlockSpec((1, 1, C), lambda b, i: (b, 0, 0)),
                       pl.BlockSpec((1, 1, C), lambda b, i: (b, 0, 0)))),
        compiler_params=pltpu.CompilerParams(
            dimension_semantics=("parallel", "arbitrary")),
    )(yp, yp, yp)
    return out, ssum, ssq


def deconv_layer(x_rows, w, B, H, Wsp, scale=None, shift=None,
                 out_dtype=jnp.bfloat16, y_dtype=jnp.bfloat16, apply_tanh=False):
    """ConvTranspose2d(4,4,stride=2,pad=1) as one GEMM + one fold kernel.
    x_rows: (B*H*Wsp, Cin) NHWC rows; w: (Cin, Cout, 4, 4) PyTorch layout."""
    Cin, Cout = w.shape[0], w.shape[1]
    wflat = jnp.transpose(w, (0, 2, 3, 1)).reshape(Cin, 16 * Cout).astype(jnp.bfloat16)
    y = pallas_matmul(x_rows.astype(jnp.bfloat16), wflat,
                      scale=scale, shift=shift, out_dtype=y_dtype)
    return conv_transpose_fold(y, B, H, Wsp, Cout, out_dtype, apply_tanh)


# ----------------------------------------------------------------------------
# Standalone BN statistics (only used for the first 5x5 layer, which has no fold)
# ----------------------------------------------------------------------------
def _bn_stats_kernel(x_ref, sum_ref, sq_ref):
    @pl.when(pl.program_id(0) == 0)
    def _():
        sum_ref[...] = jnp.zeros_like(sum_ref)
        sq_ref[...] = jnp.zeros_like(sq_ref)

    x = x_ref[...].astype(jnp.float32)
    sum_ref[...] += jnp.sum(x, axis=0, keepdims=True)
    sq_ref[...] += jnp.sum(x * x, axis=0, keepdims=True)


def pallas_bn_stats(x2):
    M, C = x2.shape
    bm = min(1024, _round_up(M, 8))
    Mp = _round_up(M, bm)
    xp = jnp.pad(x2, ((0, Mp - M), (0, 0))) if Mp > M else x2
    sums, sqs = pl.pallas_call(
        _bn_stats_kernel,
        out_shape=(jax.ShapeDtypeStruct((1, C), jnp.float32),
                   jax.ShapeDtypeStruct((1, C), jnp.float32)),
        grid_spec=pltpu.PrefetchScalarGridSpec(
            num_scalar_prefetch=0,
            grid=(Mp // bm,),
            in_specs=[pl.BlockSpec((bm, C), lambda i: (i, 0))],
            out_specs=(pl.BlockSpec((1, C), lambda i: (0, 0)),
                       pl.BlockSpec((1, C), lambda i: (0, 0)))),
        compiler_params=pltpu.CompilerParams(
            dimension_semantics=("arbitrary",)),
    )(xp)
    return sums[0], sqs[0]


def _bn_scale_shift(s_sum, s_sq, count, gamma, beta, eps=1e-5):
    mean = s_sum / count
    var = jnp.maximum(s_sq / count - mean * mean, 0.0)   # biased variance (PyTorch norm)
    inv = gamma / jnp.sqrt(var + eps)
    return inv.reshape(1, -1), (beta - mean * inv).reshape(1, -1)


# ----------------------------------------------------------------------------
# The full My_G forward (training-mode BatchNorm statistics, as in PyTorch default)
# ----------------------------------------------------------------------------
def init_params(key, nz, ngf=128, nc=3):
    chans = [nz, ngf * 16, ngf * 8, ngf * 4, ngf * 4, ngf * 4, ngf * 4, ngf * 2, ngf, nc]
    keys = jax.random.split(key, 9)
    params = {'w0': 0.02 * jax.random.normal(keys[0], (chans[0], chans[1], 5, 5), jnp.float32)}
    for i in range(1, 9):
        params[f'w{i}'] = 0.02 * jax.random.normal(
            keys[i], (chans[i], chans[i + 1], 4, 4), jnp.float32)
    for i in range(8):   # BatchNorm affine params (PyTorch default init: gamma=1, beta=0)
        params[f'g{i}'] = jnp.ones((chans[i + 1],), jnp.float32)
        params[f'b{i}'] = jnp.zeros((chans[i + 1],), jnp.float32)
    return params


def my_g_forward(x_nchw, params):
    B, nz = x_nchw.shape[0], x_nchw.shape[1]

    # Layer 0: ConvT(nz, 16*ngf, 5, stride=1, pad=0) on a 1x1 latent  -> 5x5 (pure GEMM)
    w0 = params['w0']
    C = w0.shape[1]
    wflat0 = jnp.transpose(w0, (0, 2, 3, 1)).reshape(nz, 25 * C).astype(jnp.bfloat16)
    y0 = pallas_matmul(x_nchw.reshape(B, nz).astype(jnp.bfloat16), wflat0)
    x_rows = y0.reshape(B * 25, C)                  # NHWC rows of the 5x5 activation
    s_sum, s_sq = pallas_bn_stats(x_rows)
    count = B * 25
    H = Wsp = 5

    # Layers 1..8: [BN(prev)+ReLU fused into GEMM] ConvT(4,4,2,1) [+ Tanh on the last]
    for li in range(1, 9):
        w = params[f'w{li}']
        gamma, beta = params[f'g{li - 1}'], params[f'b{li - 1}']
        scale, shift = _bn_scale_shift(s_sum, s_sq, count, gamma, beta)
        is_last = (li == 8)
        out, ps, pq = deconv_layer(
            x_rows, w, B, H, Wsp, scale=scale, shift=shift,
            out_dtype=jnp.float32 if is_last else jnp.bfloat16,
            apply_tanh=is_last)
        C = w.shape[1]
        H, Wsp = 2 * H, 2 * Wsp
        count = B * H * Wsp
        x_rows = out.reshape(B * H * Wsp, C)        # free reshape (interleaved layout)
        if not is_last:
            s_sum = jnp.sum(ps, axis=(0, 1))
            s_sq = jnp.sum(pq, axis=(0, 1))

    # TODO(synk): BatchNorm2d running-stats buffer updates are a training-time side
    # effect and are intentionally not reproduced (forward output is unaffected).
    img = x_rows.reshape(B, H, Wsp, C)              # NHWC, f32, tanh-activated
    return jnp.transpose(img, (0, 3, 1, 2))         # back to NCHW (PyTorch layout)


# ----------------------------------------------------------------------------
# Self-check of the GEMM+fold decomposition against a naive NumPy reference
# ----------------------------------------------------------------------------
def _np_conv_transpose(x, w, stride, pad):
    B, Cin, H, Wd = x.shape
    Cout, K1, K2 = w.shape[1], w.shape[2], w.shape[3]
    Ho = (H - 1) * stride + K1 - 2 * pad
    Wo = (Wd - 1) * stride + K2 - 2 * pad
    full = np.zeros((B, Cout, (H - 1) * stride + K1, (Wd - 1) * stride + K2), np.float32)
    for kh in range(K1):
        for kw in range(K2):
            contrib = np.einsum('bchw,cd->bdhw', x, w[:, :, kh, kw])
            full[:, :, kh:kh + stride * (H - 1) + 1:stride,
                       kw:kw + stride * (Wd - 1) + 1:stride] += contrib
    return full[:, :, pad:pad + Ho, pad:pad + Wo]


def _self_check():
    kx, kw = jax.random.split(jax.random.PRNGKey(1))

    # ConvTranspose2d(k=4, s=2, p=1)
    x = jax.random.normal(kx, (2, 5, 3, 4), jnp.float32)
    w = jax.random.normal(kw, (5, 7, 4, 4), jnp.float32)
    xb = np.asarray(x.astype(jnp.bfloat16).astype(jnp.float32))
    wb = np.asarray(w.astype(jnp.bfloat16).astype(jnp.float32))
    ref = _np_conv_transpose(xb, wb, 2, 1)
    x_rows = jnp.transpose(x, (0, 2, 3, 1)).reshape(2 * 3 * 4, 5)
    out6, _, _ = deconv_layer(x_rows, w, B=2, H=3, Wsp=4,
                              out_dtype=jnp.float32, y_dtype=jnp.float32)
    got = np.asarray(jnp.transpose(out6.reshape(2, 6, 8, 7), (0, 3, 1, 2)))
    np.testing.assert_allclose(got, ref, rtol=2e-2, atol=2e-2)

    # ConvTranspose2d(k=5, s=1, p=0) on a 1x1 input (first layer)
    x1 = jax.random.normal(kx, (2, 5, 1, 1), jnp.float32)
    w1 = jax.random.normal(kw, (5, 7, 5, 5), jnp.float32)
    x1b = np.asarray(x1.astype(jnp.bfloat16).astype(jnp.float32))
    w1b = np.asarray(w1.astype(jnp.bfloat16).astype(jnp.float32))
    ref1 = _np_conv_transpose(x1b, w1b, 1, 0)
    wflat = jnp.transpose(w1, (0, 2, 3, 1)).reshape(5, 25 * 7).astype(jnp.bfloat16)
    y1 = pallas_matmul(x1.reshape(2, 5).astype(jnp.bfloat16), wflat,
                       out_dtype=jnp.float32)
    got1 = np.asarray(jnp.transpose(y1.reshape(2, 5, 5, 7), (0, 3, 1, 2)))
    np.testing.assert_allclose(got1, ref1, rtol=2e-2, atol=2e-2)


if __name__ == "__main__":
    _self_check()

    # Small-width config (same 9-layer My_G architecture; ngf reduced from 128 to 8
    # so the demo fits the sandbox's 8 GB host memory).
    nz, ngf, nc, batch = 16, 8, 3, 2
    kx, kp = jax.random.split(jax.random.PRNGKey(0))
    x = jax.random.normal(kx, (batch, nz, 1, 1), jnp.float32)   # DCGAN latent (B, nz, 1, 1)
    params = init_params(kp, nz, ngf=ngf, nc=nc)

    fwd = jax.jit(my_g_forward)
    out = jax.block_until_ready(fwd(x, params))

    assert out.shape == (batch, nc, 1280, 1280), out.shape
    assert out.dtype == jnp.float32
    assert bool(jnp.all(jnp.isfinite(out)))
    assert bool(jnp.max(jnp.abs(out)) <= 1.0 + 1e-6)   # tanh range
    print("KERNEL_OK")
</pallas_src>

<mosaic_0001>
module attributes {stable_mosaic.version = 11 : i64} {
  func.func @_matmul_kernel(%arg0: i32, %arg1: i32, %arg2: i32, %arg3: memref<24x5xbf16, #tpu.memory_space<vmem>>, %arg4: memref<5x112xbf16, #tpu.memory_space<vmem>>, %arg5: memref<24x112xf32, #tpu.memory_space<vmem>>, %arg6: memref<24x112xf32, #tpu.memory_space<vmem>>) attributes {dimension_semantics = [#tpu.dimension_semantics<parallel>, #tpu.dimension_semantics<parallel>, #tpu.dimension_semantics<arbitrary>], iteration_bounds = array<i64: 1, 1, 1>, scalar_prefetch = 0 : i64, scratch_operands = 1 : i64, tpu.core_type = #tpu.core_type<tc>, window_params = [{transform_indices = @transform_0, window_bounds = array<i64: 24, 5>}, {transform_indices = @transform_1, window_bounds = array<i64: 5, 112>}, {transform_indices = @transform_2, window_bounds = array<i64: 24, 112>}]} {
    %c0_i32 = arith.constant 0 : i32
    %0 = arith.cmpi eq, %arg2, %c0_i32 : i32
    %1 = arith.extui %0 : i1 to i32
    %c0_i32_0 = arith.constant 0 : i32
    %2 = arith.cmpi ne, %1, %c0_i32_0 : i32
    scf.if %2 {
      %cst_10 = arith.constant 0.000000e+00 : f32
      %12 = vector.broadcast %cst_10 : f32 to vector<24x112xf32>
      %c0_11 = arith.constant 0 : index
      %c0_12 = arith.constant 0 : index
      %13 = vector.load %arg6[%c0_11, %c0_12] : memref<24x112xf32, #tpu.memory_space<vmem>>, vector<24x112xf32>
      tpu.vector_store %arg6[%c0_11, %c0_12], %12 {strides = array<i32>} : memref<24x112xf32, #tpu.memory_space<vmem>>, vector<24x112xf32>,
    } else {
    }
    %c0 = arith.constant 0 : index
    %c0_1 = arith.constant 0 : index
    %3 = vector.load %arg6[%c0, %c0_1] : memref<24x112xf32, #tpu.memory_space<vmem>>, vector<24x112xf32>
    %c0_2 = arith.constant 0 : index
    %c0_3 = arith.constant 0 : index
    %4 = vector.load %arg3[%c0_2, %c0_3] : memref<24x5xbf16, #tpu.memory_space<vmem>>, vector<24x5xbf16>
    %c0_4 = arith.constant 0 : index
    %c0_5 = arith.constant 0 : index
    %5 = vector.load %arg4[%c0_4, %c0_5] : memref<5x112xbf16, #tpu.memory_space<vmem>>, vector<5x112xbf16>
    %cst = arith.constant dense<0.000000e+00> : vector<24x112xf32>
    %6 = tpu.matmul %4, %5, %cst {dimension_numbers = #tpu.dot_dimension_numbers<[1], [0], [0], [1], [0, 0, 1, 1], [], []>} : vector<24x5xbf16>, vector<5x112xbf16>, vector<24x112xf32> -> vector<24x112xf32>
    %7 = arith.addf %3, %6 : vector<24x112xf32>
    %c0_6 = arith.constant 0 : index
    %c0_7 = arith.constant 0 : index
    %8 = vector.load %arg6[%c0_6, %c0_7] : memref<24x112xf32, #tpu.memory_space<vmem>>, vector<24x112xf32>
    tpu.vector_store %arg6[%c0_6, %c0_7], %7 {strides = array<i32>} : memref<24x112xf32, #tpu.memory_space<vmem>>, vector<24x112xf32>,
    %c0_i32_8 = arith.constant 0 : i32
    %9 = arith.cmpi eq, %arg2, %c0_i32_8 : i32
    %10 = arith.extui %9 : i1 to i32
    %c0_i32_9 = arith.constant 0 : i32
    %11 = arith.cmpi ne, %10, %c0_i32_9 : i32
    scf.if %11 {
      %c0_10 = arith.constant 0 : index
      %c0_11 = arith.constant 0 : index
      %12 = vector.load %arg6[%c0_10, %c0_11] : memref<24x112xf32, #tpu.memory_space<vmem>>, vector<24x112xf32>
      %c0_12 = arith.constant 0 : index
      %c0_13 = arith.constant 0 : index
      %13 = vector.load %arg5[%c0_12, %c0_13] : memref<24x112xf32, #tpu.memory_space<vmem>>, vector<24x112xf32>
      tpu.vector_store %arg5[%c0_12, %c0_13], %12 {strides = array<i32>} : memref<24x112xf32, #tpu.memory_space<vmem>>, vector<24x112xf32>,
    } else {
    }
    return
  }
  func.func @transform_0(%arg0: i32, %arg1: i32, %arg2: i32) -> (i32, i32) {
    %c0_i32 = arith.constant 0 : i32
    return %arg0, %arg2 : i32, i32
  }
  func.func @transform_1(%arg0: i32, %arg1: i32, %arg2: i32) -> (i32, i32) {
    %c0_i32 = arith.constant 0 : i32
    return %arg2, %arg1 : i32, i32
  }
  func.func @transform_2(%arg0: i32, %arg1: i32, %arg2: i32) -> (i32, i32) {
    %c0_i32 = arith.constant 0 : i32
    return %arg0, %arg1 : i32, i32
  }
}

</mosaic_0001>

<bundles_post_ra>
// kernel: tpu_custom_call.1
= control target key start
LH: loop header
LB: loop body
LE: loop exit
PB: predicated region body
PF: predicated region fallthrough
CT: control target
= control target key end

     0   :  { %vm43_vm0 = vcmask 1041408   ;;  %vm44_vm1 = vcmask 1042432   ;;  %v174_v2 = vmov 65535   ;;  %vm36_vm2 = vcmask 39936   ;;  %s224_s0 = inlined_call_operand.vmem [shape: bf16[24,5], index: 0, kind: input, shape index: {}]   ;;  %s225_s1 = inlined_call_operand.vmem [shape: bf16[5,112], index: 1, kind: input, shape index: {}]   ;;  %s226_s2 = inlined_call_operand.hbm [shape: f32[24,112], index: 2, kind: output, shape index: {}]  }
   0x1   :  { %v27_v0 = vld [vmem:[%s225_s1] sm:$0x7]  ;;  %v45_v3 = vsel %vm43_vm0, 4294967295, %v174_v2  ;;  %vm17_vm3 = vcmask 916480  }
   0x2   :  { %v148_v1 = vld [vmem:[%s224_s0] sm:$0xff]   ;;  %v46_v4 = vsel %vm44_vm1, %v45_v3, 0 }
   0x3   :  { %139 = vmatprep.mubr.msk.bf16.mxu0 %vm36_vm2, %v148_v1  ;;  %v48_v5 = vand.u32 %v46_v4, %v27_v0 }
   0x4   :  { %7 = vsyncpa [#allocation4], 0  ;;  %v175_v6 = vmov 0.0   ;;  %v149_v7 = vld [vmem:[%s224_s0 + $0x8] ss:$0 sps:$4 sm:$0xff]   ;;  %s176_s14 = smov [#allocation3]  }
   0x5   :  { %20 = vst.msk [vmem:[#allocation2 + $0x10] sm:$0xff] %vm17_vm3, %v175_v6  ;;  %18 = vst.msk [vmem:[#allocation2] sm:$0xff] %vm17_vm3, %v175_v6  ;;  %137 = vmatprep.subr.bf16.mxu0 %v48_v5  ;;  %s119_s0 = sshll.u32 %s176_s14, 4  ;;  %s120_s0 = int_to_ptr.vmem [resolvable:$true] %s119_s0 }
   0x6   :  { %19 = vst.msk [vmem:[#allocation2 + $0x8] sm:$0xff] %vm17_vm3, %v175_v6  ;;  %138 = vmatpush3.bf16.msra.mxu0 %v48_v5  ;;  %s150_s15 = scalar_lea.vmem %s120_s0, 384  ;;  %p155_p1 = scmp.lt.s32.totalorder %s120_s0, %s120_s0 }
   0x7   :  { %p151_p0 = scmp.ne.s32.totalorder %s120_s0, %s150_s15  ;;  %p156_p2 = scmp.lt.s32.totalorder %s150_s15, %s150_s15 }
   0x9   :  { %140 = vmatmul.mubr.msk.bf16.vlgmr.msra.gmra.mrb[0].mxu0 %vm36_vm2, %v149_v7  ;;  %p157_p3 = por %p156_p2, %p155_p1 }
   0xb   :  { %p158_p4 = pnand %p157_p3, %p151_p0 }
   0xc   :  { %v23_v8 = vld [vmem:[#allocation2 + $0x10] sm:$0xff]  ;;  %v21_v9 = vld [vmem:[#allocation2] sm:$0xff] }
   0xd   :  { %v22_v13 = vld [vmem:[#allocation2 + $0x8] sm:$0xff] }
  0xdc   :  { %v141_v10 = vpop.f32.mrb[0].mxu0 }
  0xdd   :  { %v100_v11 = vadd.f32 %v141_v10, %v23_v8  ;;  %v84_v12 = vpop.f32.mrb[1].mxu0 }
  0xde   :  { %v98_v14 = vadd.f32 %v84_v12, %v21_v9  ;;  %v142_v15 = vpop.f32.mrb[2].mxu0 }
  0xdf   :  { %104 = vst.msk [vmem:[#allocation2 + $0x10] sm:$0xff] %vm17_vm3, %v100_v11  ;;  %v87_v16 = vpop.f32.mrb[3].mxu0 }
  0xe0   :  { %102 = vst.msk [vmem:[#allocation2] sm:$0xff] %vm17_vm3, %v98_v14  ;;  %v99_v17 = vadd.f32 %v87_v16, %v22_v13 }
  0xe2   :  { %103 = vst.msk [vmem:[#allocation2 + $0x8] sm:$0xff] %vm17_vm3, %v99_v17 }
  0xe6   :  { %v110_v18 = vld [vmem:[#allocation2 + $0x10] sm:$0xff] }
  0xe7   :  { %v108_v19 = vld [vmem:[#allocation2] sm:$0xff]  ;;  %113 = vst.msk [vmem:[#allocation3 + $0x10] sm:$0xff] %vm17_vm3, %v110_v18 }
  0xe8   :  { %111 = vst.msk [vmem:[#allocation3] sm:$0xff] %vm17_vm3, %v108_v19 }
  0xe9   :  { %v109_v20 = vld [vmem:[#allocation2 + $0x8] sm:$0xff] }
  0xea   :  { %112 = vst.msk [vmem:[#allocation3 + $0x8] sm:$0xff] %vm17_vm3, %v109_v20 }
  0xeb   :  { %161 = shalt.err (!%p158_p4)
}
  0xec   :  { %s162_s18 = scalar_lea.hbm %s226_s2, 384 }
  0xed   :  { %p163_p5 = scmp.ne.s32.totalorder %s226_s2, %s162_s18  ;;  %p166_p6 = scmp.lt.u32.totalorder %s162_s18, %s226_s2 }
  0xef   :  { %p168_p7 = pnand %p166_p6, %p163_p5 }
  0xf1   :  { %171 = shalt.err (!%p168_p7)
}
  0xf2   :  { %s177_s23 = smov 128   ;;  %s178_s24 = smov 8  }
  0xf3   :  { %125 = dma.vmem_to_hbm [thread:$0]  %s120_s0, 384, %s226_s2, [#allocation4], %s177_s23, %s177_s23, %s178_s24  }
  0xf4   :  { %172 = dma.done.wait [#allocation4], 384  }
  0xf5   :  { %173 = vsyncadd [#allocation4], 4294966912 }
  0xf6   :  { %129 = vsyncpa [#allocation4], 1 }

</bundles_post_ra>
